<compile_context>
chip_gen: v7x
topology: tpu7x:2x2x1
jax: 0.10.0
libtpu: 0.0.40
codegen_flags: <defaults>
</compile_context>

<pallas_src>
import jax
import jax.numpy as jnp
from jax.experimental import pallas as pl
from jax.experimental.pallas import tpu as pltpu


def _round_up(x, m):
    return ((x + m - 1) // m) * m


# ---------------------------------------------------------------------------
# Kernels
# ---------------------------------------------------------------------------
def _kq_kernel_mxu(x_ref, w_ref, b_ref, o_ref):
    """MXU path: out[b] = W (C_out,C_in) @ x[b] (C_in,L) + bias, f32 accum.

    x_ref: (B_T, C_in, L)   VMEM, streamed (f32 or bf16)
    w_ref: (C_out, C_in)    VMEM, resident (same dtype as x)
    b_ref: (C_out, 1)       VMEM, resident, f32
    o_ref: (B_T, C_out, L)  VMEM, lane-dense output tile
    """
    w = w_ref[...]
    bias = b_ref[...]                              # (C_out, 1) f32
    for b in range(x_ref.shape[0]):                # B_T is small & static
        acc = jnp.dot(w, x_ref[b], preferred_element_type=jnp.float32)
        o_ref[b] = (acc + bias).astype(o_ref.dtype)


def _kq_kernel_vpu(x_ref, w_ref, b_ref, o_ref):
    """Tiny-channel path: unrolled VPU broadcast-FMA, weights/bias in SMEM.

    x_ref: (B_T, C_in, L)   VMEM, streamed (f32 or bf16)
    w_ref: (C_out, C_in)    SMEM, f32 scalars
    b_ref: (C_out,)         SMEM, f32 scalars
    o_ref: (B_T, C_out, L)  VMEM, lane-dense output tile
    """
    c_out, c_in = w_ref.shape
    for b in range(x_ref.shape[0]):
        xb = x_ref[b].astype(jnp.float32)          # (C_in, L), f32 FMA on VPU
        rows = []
        for o in range(c_out):
            acc = b_ref[o] + w_ref[o, 0] * xb[0:1, :]
            for c in range(1, c_in):
                acc = acc + w_ref[o, c] * xb[c:c + 1, :]
            rows.append(acc)                       # (1, L) f32
        o_ref[b] = jnp.concatenate(rows, axis=0).astype(o_ref.dtype)


# ---------------------------------------------------------------------------
# Tiling heuristic (VMEM-budget aware, chip-portable)
# ---------------------------------------------------------------------------
def _choose_tiles(N, C_in, C_out, HW_pad, x_item, o_item,
                  vmem_budget_bytes, target_lanes):
    pad8 = lambda c: _round_up(c, 8)
    # Bytes of one lane of streamed data (x in + out) for one image, one buffer.
    lane_bytes = pad8(C_in) * x_item + pad8(C_out) * o_item
    # Resident weight + bias (counted double-buffered, lane-padded).
    resident = 2 * (pad8(C_out) * _round_up(C_in, 128) * x_item
                    + pad8(C_out) * 128 * 4)
    stream_budget = max(vmem_budget_bytes - resident, 2 * lane_bytes * 128)
    # Total lanes (B_T * L) whose double-buffered blocks fit the budget.
    max_lanes = max(128, stream_budget // (2 * lane_bytes))

    if HW_pad <= max_lanes:
        # Whole image fits in one lane tile: fold batches so each grid step
        # moves >= target_lanes lanes per channel.
        L = HW_pad
        bt = max(1, min(N, max_lanes // HW_pad, -(-target_lanes // HW_pad)))
        # Keep >= 2 grid steps (when possible) so both v7x TensorCores get work.
        if N > 1 and bt >= N:
            bt = -(-N // 2)
        return bt, L

    # Large feature maps: one image per step, budget-limited lane tile rounded
    # down to a multiple of 512 (falls back to 128-multiples).
    L = (max_lanes // 512) * 512
    if L == 0:
        L = (max_lanes // 128) * 128
    return 1, min(L, HW_pad)


# ---------------------------------------------------------------------------
# Wrapper
# ---------------------------------------------------------------------------
def key_query_map(x, weight, bias, *,
                  stream_dtype=None,
                  vmem_budget_bytes=36 * 1024 * 1024,
                  vmem_limit_bytes=48 * 1024 * 1024,
                  target_lanes_per_step=1024):
    """1x1 conv forward (KeyQueryMap): out[n,o,h,w] = sum_c W[o,c]*x[n,c,h,w] + b[o].

    x:      (N, C_in, H, W)                        float (NCHW, PyTorch layout)
    weight: (C_out, C_in) or (C_out, C_in, 1, 1)   Conv2d weight
    bias:   (C_out,)
    stream_dtype: optional narrower streaming dtype (e.g. jnp.bfloat16); the
        accumulation / bias add stay f32 and the output keeps x.dtype.
    returns (N, C_out, H, W) with x.dtype.
    """
    N, C_in, H, W = x.shape
    C_out = weight.shape[0]
    HW = H * W
    out_dtype = x.dtype

    w2 = weight.reshape(C_out, C_in)
    if stream_dtype is not None:
        x = x.astype(stream_dtype)
        w2 = w2.astype(stream_dtype)

    # Channel-major, spatial on lanes; pad lanes to a multiple of 128 so every
    # output store is an unmasked full-width vst.
    HW_pad = _round_up(HW, 128)
    x_cm = x.reshape(N, C_in, HW)
    if HW_pad != HW:
        x_cm = jnp.pad(x_cm, ((0, 0), (0, 0), (0, HW_pad - HW)))

    x_item = jnp.dtype(x_cm.dtype).itemsize
    o_item = jnp.dtype(out_dtype).itemsize
    B_T, L = _choose_tiles(N, C_in, C_out, HW_pad, x_item, o_item,
                           vmem_budget_bytes, target_lanes_per_step)
    grid = (pl.cdiv(N, B_T), pl.cdiv(HW_pad, L))

    x_spec = pl.BlockSpec((B_T, C_in, L), lambda n, j: (n, 0, j))
    out_spec = pl.BlockSpec((B_T, C_out, L), lambda n, j: (n, 0, j))

    use_vpu = (C_out < 8) and (C_in <= 8)
    if use_vpu:
        # Tiny channels: weights/bias as resident SMEM scalars, VPU FMA kernel.
        kernel = _kq_kernel_vpu
        w_arg = weight.reshape(C_out, C_in).astype(jnp.float32)
        b_arg = bias.astype(jnp.float32)
        w_spec = pl.BlockSpec(memory_space=pltpu.MemorySpace.SMEM)
        b_spec = pl.BlockSpec(memory_space=pltpu.MemorySpace.SMEM)
    else:
        # General path: resident VMEM weight/bias, MXU matmul with f32 accum.
        kernel = _kq_kernel_mxu
        w_arg = w2
        b_arg = bias.astype(jnp.float32).reshape(C_out, 1)
        w_spec = pl.BlockSpec((C_out, C_in), lambda n, j: (0, 0))
        b_spec = pl.BlockSpec((C_out, 1), lambda n, j: (0, 0))

    cost = pl.CostEstimate(
        flops=2 * N * C_out * C_in * HW,
        bytes_accessed=(N * HW * C_in * x_item + N * HW * C_out * o_item
                        + C_out * C_in * x_item + C_out * 4),
        transcendentals=0,
    )

    out_cm = pl.pallas_call(
        kernel,
        out_shape=jax.ShapeDtypeStruct((N, C_out, HW_pad), out_dtype),
        grid=grid,
        in_specs=[x_spec, w_spec, b_spec],
        out_specs=out_spec,
        compiler_params=pltpu.CompilerParams(
            dimension_semantics=("parallel", "parallel"),
            vmem_limit_bytes=vmem_limit_bytes,
        ),
        cost_estimate=cost,
    )(x_cm, w_arg, b_arg)

    if HW_pad != HW:
        out_cm = out_cm[:, :, :HW]
    return out_cm.reshape(N, C_out, H, W)


# ---------------------------------------------------------------------------
# Self-test
# ---------------------------------------------------------------------------
if __name__ == "__main__":
    key = jax.random.PRNGKey(0)

    def _ref(x, w, b):
        # Pure elementwise + sum reference (no matmul precision ambiguity).
        return (x[:, None, :, :, :] * w[None, :, :, None, None]).sum(axis=2) \
            + b[None, :, None, None]

    # --- Case 1: shipped KeyQueryMap(channels=4, m=2) -> tiny-channel VPU path
    N, C, H, W = 2, 4, 16, 16
    m = 2
    C_out = C // m
    k1, k2, k3, key = jax.random.split(key, 4)
    x = jax.random.normal(k1, (N, C, H, W), dtype=jnp.float32)
    weight = jax.random.normal(k2, (C_out, C), dtype=jnp.float32) * 0.1
    bias = jax.random.normal(k3, (C_out,), dtype=jnp.float32) * 0.01

    out = jax.block_until_ready(key_query_map(x, weight, bias))
    ref = _ref(x, weight, bias)
    assert out.shape == (N, C_out, H, W)
    assert jnp.allclose(out, ref, atol=1e-5, rtol=1e-5)

    # Same case with bf16 streaming (halved HBM bytes), f32 accumulation.
    out_bf16 = jax.block_until_ready(
        key_query_map(x, weight, bias, stream_dtype=jnp.bfloat16))
    assert out_bf16.shape == (N, C_out, H, W)
    assert jnp.allclose(out_bf16, ref, atol=3e-2, rtol=3e-2)

    # --- Case 2: larger channels + non-multiple-of-128 spatial -> MXU path
    #             (exercises lane padding 14*14=196 -> 256 and the MXU kernel).
    N2, C2, H2, W2 = 2, 64, 14, 14
    C2_out = C2 // m
    k1, k2, k3, key = jax.random.split(key, 4)
    x2 = jax.random.normal(k1, (N2, C2, H2, W2), dtype=jnp.float32)
    w2 = jax.random.normal(k2, (C2_out, C2), dtype=jnp.float32) * 0.05
    b2 = jax.random.normal(k3, (C2_out,), dtype=jnp.float32) * 0.01
    out2 = jax.block_until_ready(key_query_map(x2, w2, b2))
    assert out2.shape == (N2, C2_out, H2, W2)
    assert jnp.allclose(out2, _ref(x2, w2, b2), atol=5e-3, rtol=5e-3)

    print("KERNEL_OK")
</pallas_src>

<mosaic_0001>
module attributes {stable_mosaic.version = 11 : i64} {
  func.func @_kq_kernel_vpu(%arg0: i32, %arg1: i32, %arg2: memref<1x4x256xf32, #tpu.memory_space<vmem>>, %arg3: memref<2x4xf32, #tpu.memory_space<smem>>, %arg4: memref<2xf32, #tpu.memory_space<smem>>, %arg5: memref<1x2x256xf32, #tpu.memory_space<vmem>>) attributes {dimension_semantics = [#tpu.dimension_semantics<parallel>, #tpu.dimension_semantics<parallel>], iteration_bounds = array<i64: 2, 1>, scalar_prefetch = 0 : i64, scratch_operands = 0 : i64, tpu.core_type = #tpu.core_type<tc>, window_params = [{transform_indices = @transform_0, window_bounds = array<i64: 1, 4, 256>}, {transform_indices = @transform_1, window_bounds = array<i64: 2, 4>}, {transform_indices = @transform_2, window_bounds = array<i64: 2>}, {transform_indices = @transform_3, window_bounds = array<i64: 1, 2, 256>}]} {
    %c0 = arith.constant 0 : index
    %c0_0 = arith.constant 0 : index
    %c0_1 = arith.constant 0 : index
    %0 = vector.load %arg2[%c0, %c0_0, %c0_1] : memref<1x4x256xf32, #tpu.memory_space<vmem>>, vector<1x4x256xf32>
    %1 = vector.shape_cast %0 : vector<1x4x256xf32> to vector<4x256xf32>
    %c0_2 = arith.constant 0 : index
    %2 = memref.load %arg4[%c0_2] : memref<2xf32, #tpu.memory_space<smem>>
    %c0_3 = arith.constant 0 : index
    %c0_4 = arith.constant 0 : index
    %3 = memref.load %arg3[%c0_3, %c0_4] : memref<2x4xf32, #tpu.memory_space<smem>>
    %4 = vector.extract_strided_slice %1 {offsets = [0, 0], sizes = [1, 256], strides = [1, 1]} : vector<4x256xf32> to vector<1x256xf32>
    %5 = vector.broadcast %3 : f32 to vector<1x256xf32>
    %6 = arith.mulf %5, %4 : vector<1x256xf32>
    %7 = vector.broadcast %2 : f32 to vector<1x256xf32>
    %8 = arith.addf %7, %6 : vector<1x256xf32>
    %c0_5 = arith.constant 0 : index
    %c1 = arith.constant 1 : index
    %9 = memref.load %arg3[%c0_5, %c1] : memref<2x4xf32, #tpu.memory_space<smem>>
    %10 = vector.extract_strided_slice %1 {offsets = [1, 0], sizes = [1, 256], strides = [1, 1]} : vector<4x256xf32> to vector<1x256xf32>
    %11 = vector.broadcast %9 : f32 to vector<1x256xf32>
    %12 = arith.mulf %11, %10 : vector<1x256xf32>
    %13 = arith.addf %8, %12 : vector<1x256xf32>
    %c0_6 = arith.constant 0 : index
    %c2 = arith.constant 2 : index
    %14 = memref.load %arg3[%c0_6, %c2] : memref<2x4xf32, #tpu.memory_space<smem>>
    %15 = vector.extract_strided_slice %1 {offsets = [2, 0], sizes = [1, 256], strides = [1, 1]} : vector<4x256xf32> to vector<1x256xf32>
    %16 = vector.broadcast %14 : f32 to vector<1x256xf32>
    %17 = arith.mulf %16, %15 : vector<1x256xf32>
    %18 = arith.addf %13, %17 : vector<1x256xf32>
    %c0_7 = arith.constant 0 : index
    %c3 = arith.constant 3 : index
    %19 = memref.load %arg3[%c0_7, %c3] : memref<2x4xf32, #tpu.memory_space<smem>>
    %20 = vector.extract_strided_slice %1 {offsets = [3, 0], sizes = [1, 256], strides = [1, 1]} : vector<4x256xf32> to vector<1x256xf32>
    %21 = vector.broadcast %19 : f32 to vector<1x256xf32>
    %22 = arith.mulf %21, %20 : vector<1x256xf32>
    %23 = arith.addf %18, %22 : vector<1x256xf32>
    %c1_8 = arith.constant 1 : index
    %24 = memref.load %arg4[%c1_8] : memref<2xf32, #tpu.memory_space<smem>>
    %c1_9 = arith.constant 1 : index
    %c0_10 = arith.constant 0 : index
    %25 = memref.load %arg3[%c1_9, %c0_10] : memref<2x4xf32, #tpu.memory_space<smem>>
    %26 = vector.extract_strided_slice %1 {offsets = [0, 0], sizes = [1, 256], strides = [1, 1]} : vector<4x256xf32> to vector<1x256xf32>
    %27 = vector.broadcast %25 : f32 to vector<1x256xf32>
    %28 = arith.mulf %27, %26 : vector<1x256xf32>
    %29 = vector.broadcast %24 : f32 to vector<1x256xf32>
    %30 = arith.addf %29, %28 : vector<1x256xf32>
    %c1_11 = arith.constant 1 : index
    %c1_12 = arith.constant 1 : index
    %31 = memref.load %arg3[%c1_11, %c1_12] : memref<2x4xf32, #tpu.memory_space<smem>>
    %32 = vector.extract_strided_slice %1 {offsets = [1, 0], sizes = [1, 256], strides = [1, 1]} : vector<4x256xf32> to vector<1x256xf32>
    %33 = vector.broadcast %31 : f32 to vector<1x256xf32>
    %34 = arith.mulf %33, %32 : vector<1x256xf32>
    %35 = arith.addf %30, %34 : vector<1x256xf32>
    %c1_13 = arith.constant 1 : index
    %c2_14 = arith.constant 2 : index
    %36 = memref.load %arg3[%c1_13, %c2_14] : memref<2x4xf32, #tpu.memory_space<smem>>
    %37 = vector.extract_strided_slice %1 {offsets = [2, 0], sizes = [1, 256], strides = [1, 1]} : vector<4x256xf32> to vector<1x256xf32>
    %38 = vector.broadcast %36 : f32 to vector<1x256xf32>
    %39 = arith.mulf %38, %37 : vector<1x256xf32>
    %40 = arith.addf %35, %39 : vector<1x256xf32>
    %c1_15 = arith.constant 1 : index
    %c3_16 = arith.constant 3 : index
    %41 = memref.load %arg3[%c1_15, %c3_16] : memref<2x4xf32, #tpu.memory_space<smem>>
    %42 = vector.extract_strided_slice %1 {offsets = [3, 0], sizes = [1, 256], strides = [1, 1]} : vector<4x256xf32> to vector<1x256xf32>
    %43 = vector.broadcast %41 : f32 to vector<1x256xf32>
    %44 = arith.mulf %43, %42 : vector<1x256xf32>
    %45 = arith.addf %40, %44 : vector<1x256xf32>
    %46 = tpu.concatenate %23, %45 in 0 : vector<1x256xf32>, vector<1x256xf32> -> vector<2x256xf32>
    %c0_17 = arith.constant 0 : index
    %c0_18 = arith.constant 0 : index
    %c0_19 = arith.constant 0 : index
    %47 = vector.load %arg5[%c0_17, %c0_18, %c0_19] : memref<1x2x256xf32, #tpu.memory_space<vmem>>, vector<1x2x256xf32>
    %48 = vector.shape_cast %47 : vector<1x2x256xf32> to vector<2x256xf32>
    %49 = vector.shape_cast %46 : vector<2x256xf32> to vector<1x2x256xf32>
    tpu.vector_store %arg5[%c0_17, %c0_18, %c0_19], %49 {strides = array<i32>} : memref<1x2x256xf32, #tpu.memory_space<vmem>>, vector<1x2x256xf32>,
    return
  }
  func.func @transform_0(%arg0: i32, %arg1: i32) -> (i32, i32, i32) {
    %c0_i32 = arith.constant 0 : i32
    %c0_i32_0 = arith.constant 0 : i32
    return %arg0, %c0_i32, %arg1 : i32, i32, i32
  }
  func.func @transform_1(%arg0: i32, %arg1: i32) -> (i32, i32) {
    %c0_i32 = arith.constant 0 : i32
    %c0_i32_0 = arith.constant 0 : i32
    %c0_i32_1 = arith.constant 0 : i32
    return %c0_i32, %c0_i32_0 : i32, i32
  }
  func.func @transform_2(%arg0: i32, %arg1: i32) -> i32 {
    %c0_i32 = arith.constant 0 : i32
    %c0_i32_0 = arith.constant 0 : i32
    return %c0_i32 : i32
  }
  func.func @transform_3(%arg0: i32, %arg1: i32) -> (i32, i32, i32) {
    %c0_i32 = arith.constant 0 : i32
    %c0_i32_0 = arith.constant 0 : i32
    return %arg0, %c0_i32, %arg1 : i32, i32, i32
  }
}

</mosaic_0001>

<bundles_post_ra>
// kernel: tpu_custom_call.1
= control target key start
LH: loop header
LB: loop body
LE: loop exit
PB: predicated region body
PF: predicated region fallthrough
CT: control target
= control target key end

     0   :  { %8 = vsyncpa [#allocation3], 0  ;;  %s961_s0 = inlined_call_operand.hbm [shape: f32[2,4,256], index: 0, kind: input, shape index: {}]   ;;  %s962_s1 = inlined_call_operand.vmem [shape: f32[2,4], index: 1, kind: input, shape index: {}]   ;;  %s963_s2 = inlined_call_operand.vmem [shape: f32[2], index: 2, kind: input, shape index: {}]   ;;  %s964_s3 = inlined_call_operand.hbm [shape: f32[2,2,256], index: 3, kind: output, shape index: {}]  }
   0x1   :  { %10 = vsyncpa [#allocation3 + $0x1], 0 }
   0x2   :  { %11 = vsyncpa [#allocation5], 0 }
   0x3   :  { %12 = vsyncpa [#allocation8], 0 }
   0x4   :  { %13 = vsyncpa [#allocation4], 0 }
   0x5   :  { %15 = vsyncpa [#allocation4 + $0x1], 0  ;;  %s750_s12 = smov 0   ;;  %s752_s13 = smov 0  }
   0x6   :  { %s754_s14 = smov 0   ;;  %s756_s15 = smov 0  }
   0x7   :  { %s758_s16 = smov 0   ;;  %s760_s17 = smov 0  }
   0x8 LB: > { %s455_s18 = sadd.s32 4294967295, %s724_s17   ;;  %s456_s19 = sadd.s32 4294967294, %s724_s17   ;;  %s724_s17 = sphi %s760_s17, %s21_s17   ;;  %s720_s16 = sphi %s758_s16, %s987_s16   ;;  %s716_s15 = sphi %s756_s15, %s986_s15   ;;  %s712_s14 = sphi %s754_s14, %s985_s14   ;;  %s708_s13 = sphi %s752_s13, %s984_s13   ;;  %s704_s12 = sphi %s750_s12, %s983_s12  }
   0x9   : > { %p55_p0 = scmp.ne.s32.totalorder %s708_s13, %s704_s12  ;;  %p784_p1 = scmp.eq.s32.totalorder %s455_s18, 0 }
   0xa   : > { %p788_p2 = scmp.eq.s32.totalorder %s455_s18, 1  ;;  %p129_p3 = scmp.eq.s32.totalorder %s456_s19, 1 }
   0xb   : > { %s969_s20 = scalar_select %p784_p1, 1, 0 }
   0xc   : > { %s970_s21 = scalar_select %p788_p2, 1, 0 }
   0xd   : > { %p794_p4 = por %p784_p1, %p55_p0  ;;  %p457_p5 = scmp.ge.s32.totalorder %s724_s17, 1 }
   0xe   : > { %p799_p6 = por %p129_p3, %p55_p0  ;;  %p136_p7 = scmp.lt.s32.totalorder %s724_s17, 3 }
   0xf   : > { %s971_s22 = scalar_select %p794_p4, 1, 0 }
  0x10   : > { %s972_s23 = scalar_select %p799_p6, 1, 0 }
  0x11   : > { %s149_s26 = sshll.u32 %s962_s1, 4  ;;  %p807_p8 = pnand %p457_p5, %p136_p7  ;;  %s150_s26 = int_to_ptr.vmem [resolvable:$true] %s149_s26 }
  0x12   : > { %s160_s30 = sshll.u32 %s963_s2, 4  ;;  %s574_s5 = scalar_lea.vmem %s150_s26, 32  ;;  %s161_s30 = int_to_ptr.vmem [resolvable:$true] %s160_s30 }
  0x13   : > { %s973_s27 = scalar_select %p807_p8, 1, 0 }
  0x14   : > { %p503_p10 = pneg %p807_p8  ;;  %p575_p12 = scmp.ne.s32.totalorder %s150_s26, %s574_s5 }
  0x15   : > { %p582_p5 = scmp.lt.s32.totalorder %s150_s26, %s150_s26  ;;  %p583_p7 = scmp.lt.s32.totalorder %s574_s5, %s574_s5 }
  0x16   : > { %p819_p11 = pnand %p503_p10, %p784_p1 }
  0x17   : > { %p584_p9 = por %p583_p7, %p582_p5 }
  0x18   : > { %p576_p13 = pneg %p819_p11 }
  0x1a   : > { %p577_p0 = pnand %p576_p13, %p575_p12 }
  0x1c   : > { %p578_p3 = pneg %p577_p0 }
  0x1e   : > { %p585_p6 = pnand %p584_p9, %p578_p3 }
  0x20   : > { %588 = shalt.err (!%p585_p6)
}
  0x21   : > { %s726_s6 = smov [#allocation6]   ;;  %s589_s7 = scalar_lea.vmem %s161_s30, 16 }
  0x22   : > { %506 = dma.vmem_to_smem (!%p819_p11), %s150_s26, 32, %s726_s6, [#allocation5]  }
  0x23   : > { %p590_p10 = scmp.ne.s32.totalorder %s161_s30, %s589_s7  ;;  %p597_p8 = scmp.lt.s32.totalorder %s161_s30, %s161_s30 }
  0x24   : > { %p598_p2 = scmp.lt.s32.totalorder %s589_s7, %s589_s7 }
  0x25   : > { %p592_p1 = pnand %p590_p10, %p576_p13 }
  0x26   : > { %p599_p12 = por %p598_p2, %p597_p8 }
  0x27   : > { %p593_p4 = pneg %p592_p1 }
  0x29   : > { %p600_p0 = pnand %p599_p12, %p593_p4 }
  0x2b   : > { %603 = shalt.err (!%p600_p0)
}
  0x2c   : > { %s727_s8 = smov [#allocation7]   ;;  %s33_s9 = sadd.s32 1, %s720_s16 }
  0x2d   : > { %509 = dma.vmem_to_smem (!%p819_p11), %s161_s30, 16, %s727_s8, [#allocation8]  }
  0x2e   : > { %s42_s10 = sadd.s32 1, %s712_s14  ;;  %p35_p1 = scmp.ge.s32.totalorder %s33_s9, 2 }
  0x2f   : > { %p49_p2 = scmp.ne.s32.totalorder %s712_s14, %s708_s13  ;;  %p50_p4 = scmp.eq.s32.totalorder %s724_s17, 0 }
  0x30   : > { %p520_p6 = scmp.lt.s32.totalorder %s724_s17, 2  ;;  %s989_s9 = smov (%p35_p1, %s33_s9), 0 }
  0x31   : > { %p51_p8 = por %p50_p4, %p49_p2  ;;  %p975_p9 = scmp.ne.s32.totalorder %s970_s21, 0 }
  0x32   : > { %s37_s18 = ssub.s32 %s720_s16, %s989_s9  ;;  %s171_s19 = sand.u32 1, %s712_s14  }
  0x33   : > { %p839_p13 = por %p975_p9, %p49_p2  ;;  %p40_p3 = scmp.eq.s32.totalorder %s37_s18, 0 }
  0x34   : > { %s461_s24 = sshll.u32 %s171_s19, 3  ;;  %s489_s25 = sshll.u32 %s720_s16, 7 }
  0x35   : > { %s848_s26 = scalar_select %p40_p3, %s712_s14, %s42_s10  }
  0x36   : > { %s853_s30 = scalar_lea.hbm %s961_s0, %s489_s25  ;;  %s175_s21 = scalar_lea.vmem [#allocation2], %s461_s24 }
  0x37   : > { %s185_s4 = sshll.u32 %s175_s21, 4  ;;  %p857_p11 = pnand %p520_p6, %p51_p8  ;;  %s861_s4 = int_to_ptr.vmem [resolvable:$true] %s185_s4 }
  0x38   : > { %s172_s6 = scalar_lea.sflag [#allocation3], %s171_s19  ;;  %s604_s7 = scalar_lea.hbm %s853_s30, 128 }
  0x39   : > { %p605_p5 = scmp.ne.s32.totalorder %s853_s30, %s604_s7  ;;  %p606_p7 = pneg %p857_p11 }
  0x3a   : > { %s609_s18 = scalar_lea.hbm %s961_s0, 256  ;;  %p610_p0 = scmp.lt.u32.totalorder %s853_s30, %s961_s0 }
  0x3b   : > { %p607_p10 = pnand %p606_p7, %p605_p5  ;;  %p611_p1 = scmp.lt.u32.totalorder %s609_s18, %s604_s7 }
  0x3c   : > { %p613_p4 = scmp.lt.u32.totalorder %s604_s7, %s853_s30 }
  0x3d   : > { %p608_p12 = pneg %p607_p10  ;;  %p612_p2 = por %p611_p1, %p610_p0 }
  0x3f   : > { %p614_p6 = por %p613_p4, %p612_p2 }
  0x41   : > { %p615_p8 = pnand %p614_p6, %p608_p12 }
  0x43   : > { %618 = shalt.err (!%p615_p8)
}
  0x44   : > { %s619_s19 = scalar_lea.vmem %s861_s4, 128  ;;  %s728_s28 = smov [#allocation2]  }
  0x45   : > { %p620_p9 = scmp.ne.s32.totalorder %s861_s4, %s619_s19  ;;  %s624_s29 = sshll.u32 %s728_s28, 4  ;;  %s625_s29 = int_to_ptr.vmem [resolvable:$false] %s624_s29 }
  0x46   : > { %s626_s21 = scalar_lea.vmem %s625_s29, 256  ;;  %p627_p10 = scmp.lt.s32.totalorder %s861_s4, %s625_s29 }
  0x47   : > { %p622_p3 = pnand %p620_p9, %p606_p7  ;;  %p628_p0 = scmp.lt.s32.totalorder %s626_s21, %s619_s19 }
  0x49   : > { %p623_p5 = pneg %p622_p3  ;;  %p629_p1 = por %p628_p0, %p627_p10 }
  0x4b   : > { %p630_p2 = pnand %p629_p1, %p623_p5 }
  0x4d   : > { %633 = shalt.err (!%p630_p2)
}
  0x4e   : > { %513 = dma.hbm_to_vmem [thread:$0]  (!%p857_p11), %s853_s30, 128, %s861_s4, %s172_s6  }
  0x4f   : > { %p978_p12 = scmp.ne.s32.totalorder %s973_s27, 0 }
  0x50   : > { %s891_s7 = sand.u32 (!%p978_p12), 1, %s708_s13   ;;  %p979_p7 = scmp.ne.s32.totalorder (!%p978_p12), %s971_s22, 0 }
  0x51   : > { %194 = sbr.rel (%p978_p12) target bundleno = 135 (0x87), region = 32  ;;  %s465_s8 = sshll.u32 (!%p978_p12), %s891_s7, 3 }
  0x52   : > { %s197_s10 = scalar_lea.sflag (!%p978_p12), [#allocation3], %s891_s7  ;;  %s200_s18 = scalar_lea.vmem (!%p978_p12), [#allocation2], %s465_s8 }
  0x58   : > { %687 = dma.done.wait (%p979_p7), %s197_s10, 128  }
  0x59   : > { %689 = vsyncadd (%p979_p7), %s197_s10, 4294967168  ;;  %p980_p4 = scmp.ne.s32.totalorder %s969_s20, 0 }
  0x5b   : > { %691 = dma.done.wait (%p980_p4), [#allocation5], 32  }
  0x5c   : > { %693 = vsyncadd (%p980_p4), [#allocation5], 4294967264 }
  0x5d   : > { %695 = dma.done.wait (%p980_p4), [#allocation8], 16  }
  0x5e   : > { %697 = vsyncadd (%p980_p4), [#allocation8], 4294967280 }
  0x5f   : > { %213 = sfence }
  0x60   : > { %s235_s27 = sld [smem:[#allocation7]]  ;;  %s469_s4 = sld [smem:[#allocation6 + $0x1]]  ;;  %v296_v0 = vlaneseq  ;;  %v234_v1 = vld [vmem:[%s200_s18] sm:$0xff]  ;;  %vm317_vm0 = vcmask 1040384  }
  0x61   : > { %s236_s30 = sld [smem:[#allocation6]]  ;;  %s471_s5 = sld [smem:[#allocation6 + $0x2]] }
  0x62   : > { %s473_s6 = sld [smem:[#allocation6 + $0x3]]  ;;  %s475_s22 = sld [smem:[#allocation7 + $0x1]]  ;;  %v297_v7 = vshrl.u32 %v296_v0, 7 }
  0x63   : > { %s476_s24 = sld [smem:[#allocation6 + $0x80]]  ;;  %s477_s25 = sld [smem:[#allocation6 + $0x81]] }
  0x64   : > { %s479_s19 = sld [smem:[#allocation6 + $0x82]]  ;;  %s481_s28 = sld [smem:[#allocation6 + $0x83]]  ;;  %v298_v28 = vsub.s32 0, %v297_v7  ;;  %v302_v32 = vsub.s32 4, %v297_v7 }
  0x65   : > { %s468_s20 = sshll.u32 %s891_s7, 2  ;;  %s490_s8 = sshll.u32 %s716_s15, 6 }
  0x66   : > { %v239_v3 = vstv %s235_s27  ;;  %v242_v5 = vstv %s469_s4  ;;  %s231_s29 = scalar_lea.vmem [#allocation9], %s468_s20  ;;  %s914_s27 = scalar_lea.hbm %s964_s3, %s490_s8 }
  0x67   : > { %v237_v2 = vstv %s236_s30  ;;  %v250_v6 = vstv %s471_s5  ;;  %v243_v8 = vmul.f32 %v242_v5, %v234_v1  ;;  %s349_s21 = sshll.u32 %s231_s29, 4  ;;  %s333_s30 = scalar_lea.sflag [#allocation4], %s891_s7  ;;  %s909_s21 = int_to_ptr.vmem [resolvable:$true] %s349_s21 }
  0x68   : > { %v238_v4 = vmul.f32 %v237_v2, %v234_v1  ;;  %v251_v9 = vmul.f32 %v250_v6, %v234_v1  ;;  %v258_v10 = vstv %s473_s6  ;;  %v269_v11 = vstv %s475_s22  ;;  %s634_s4 = scalar_lea.vmem %s909_s21, 64  ;;  %s729_s15 = smov [#allocation9]  }
  0x69   : > { %v259_v13 = vmul.f32 %v258_v10, %v234_v1  ;;  %v267_v14 = vstv %s476_s24  ;;  %v272_v15 = vstv %s477_s25  ;;  %v470_v16 = vrot.slane %v243_v8, 9  ;;  %p635_p11 = scmp.ne.s32.totalorder %s909_s21, %s634_s4  ;;  %s638_s5 = sshll.u32 %s729_s15, 4  ;;  %s639_s5 = int_to_ptr.vmem [resolvable:$false] %s638_s5 }
  0x6a   : > { %v240_v12 = vadd.f32 %v239_v3, %v238_v4  ;;  %v472_v17 = vrot.slane %v251_v9, 10  ;;  %v268_v18 = vmul.f32 %v267_v14, %v234_v1  ;;  %v273_v19 = vmul.f32 %v272_v15, %v234_v1  ;;  %s640_s6 = scalar_lea.vmem %s639_s5, 128  ;;  %p641_p9 = scmp.lt.s32.totalorder %s909_s21, %s639_s5 }
  0x6b   : > { %v474_v20 = vrot.slane %v259_v13, 11  ;;  %v280_v21 = vstv %s479_s19  ;;  %v288_v22 = vstv %s481_s28  ;;  %p636_p6 = pnand %p635_p11, %p839_p13  ;;  %p642_p3 = scmp.lt.s32.totalorder %s640_s6, %s634_s4 }
  0x6c   : > { %v248_v23 = vadd.f32 %v470_v16, %v240_v12  ;;  %v270_v24 = vadd.f32 %v269_v11, %v268_v18  ;;  %v478_v25 = vrot.slane %v273_v19, 9  ;;  %v281_v26 = vmul.f32 %v280_v21, %v234_v1 }
  0x6d   : > { %v289_v27 = vmul.f32 %v288_v22, %v234_v1  ;;  %p637_p8 = pneg %p636_p6  ;;  %p643_p5 = por %p642_p3, %p641_p9 }
  0x6e   : > { %v256_v29 = vadd.f32 %v472_v17, %v248_v23  ;;  %v278_v30 = vadd.f32 %v478_v25, %v270_v24  ;;  %v480_v31 = vrot.slane %v281_v26, 10 }
  0x6f   : > { %v482_v33 = vrot.slane %v289_v27, 11  ;;  %p644_p10 = pnand %p643_p5, %p637_p8 }
  0x70   : > { %v264_v34 = vadd.f32 %v474_v20, %v256_v29  ;;  %v286_v35 = vadd.f32 %v480_v31, %v278_v30 }
  0x72   : > { %v294_v36 = vadd.f32 %v482_v33, %v286_v35  ;;  %v299_v37 = vrot.slane %v264_v34, %v298_v28  ;;  %v303_v38 = vrot.slane %v264_v34, %v302_v32 }
  0x74   : > { %v310_v39 = vrot.slane %v294_v36, %v298_v28  ;;  %v314_v40 = vrot.slane %v294_v36, %v302_v32 }
  0x76   : > { %v318_v41 = vsel %vm317_vm0, %v299_v37, %v310_v39  ;;  %v319_v42 = vsel %vm317_vm0, %v303_v38, %v314_v40 }
  0x77   : > { %v322_v43 = vcombine.low %v318_v41, %v319_v42 }
  0x79   : > { %483 = vst.sshfl [vmem:[%s231_s29] sm:$0x33 pattern:$0x76325410] %v322_v43 }
  0x7a   : > { %647 = shalt.err (!%p644_p10)
}
  0x7b   : > { %s648_s7 = scalar_lea.hbm %s914_s27, 64  ;;  %s652_s25 = scalar_lea.hbm %s964_s3, 128 }
  0x7c   : > { %p649_p0 = scmp.ne.s32.totalorder %s914_s27, %s648_s7  ;;  %p653_p12 = scmp.lt.u32.totalorder %s914_s27, %s964_s3 }
  0x7d   : > { %p654_p7 = scmp.lt.u32.totalorder %s652_s25, %s648_s7  ;;  %p656_p11 = scmp.lt.u32.totalorder %s648_s7, %s914_s27 }
  0x7e   : > { %p650_p1 = pnand %p649_p0, %p839_p13 }
  0x7f   : > { %p655_p4 = por %p654_p7, %p653_p12 }
  0x80   : > { %p651_p2 = pneg %p650_p1 }
  0x81   : > { %p657_p6 = por %p656_p11, %p655_p4 }
  0x83   : > { %p658_p8 = pnand %p657_p6, %p651_p2 }
  0x85   : > { %661 = shalt.err (!%p658_p8)
}
  0x86   : > { %501 = dma.vmem_to_hbm [thread:$0]  (%p839_p13), %s909_s21, 64, %s914_s27, %s333_s30  }
  0x87 PF: > { %s361_s20 = sand.u32 1, %s704_s12   ;;  %p981_p9 = scmp.ne.s32.totalorder %s972_s23, 0 }
  0x88   : > { %p982_p3 = scmp.ge.s32.totalorder %s724_s17, 2  ;;  %s362_s29 = scalar_lea.sflag [#allocation4], %s361_s20 }
  0x8a   : > { %p515_p5 = pnand %p982_p3, %p981_p9 }
  0x8c   : > { %699 = dma.done.wait (!%p515_p5), %s362_s29, 64  }
  0x8d   : > { %701 = vsyncadd (!%p515_p5), %s362_s29, 4294967232  ;;  %s21_s17 = sadd.s32 1, %s724_s17   ;;  %s983_s12 = smov %s708_s13 }
  0x8e   : > { %p18_p10 = scmp.ge.s32.totalorder %s21_s17, 4   ;;  %s984_s13 = smov %s712_s14 }
  0x8f   : > { %s985_s14 = smov %s848_s26  ;;  %s986_s15 = smov %s720_s16 }
  0x90   : > { %s987_s16 = smov %s989_s9  ;;  %20 = sbr.rel (!%p18_p10) target bundleno = 8 (0x8), region = 86 }
  0x97   :  { %367 = vsyncpa [#allocation3], 1 }
  0x98   :  { %369 = vsyncpa [#allocation3 + $0x1], 1 }
  0x99   :  { %370 = vsyncpa [#allocation4], 1 }
  0x9a   :  { %372 = vsyncpa [#allocation4 + $0x1], 1 }
  0x9b   :  { %373 = vsyncpa [#allocation5], 1 }
  0x9c   :  { %375 = vsyncpa [#allocation5 + $0x1], 1 }
  0x9d   :  { %376 = vsyncpa [#allocation8], 1 }

</bundles_post_ra>
